<compile_context>
chip_gen: v5e
topology: v5e:2x2
jax: 0.10.0
libtpu: 0.0.40
codegen_flags: <defaults>
</compile_context>

<pallas_src>
import jax
import jax.numpy as jnp
from jax.experimental import pallas as pl
from jax.experimental.pallas import tpu as pltpu

# Synthetic feature schema (mirrors NUMERIC_FEATURES / CATEGORICAL_FEATURES)
NUMERIC_FEATURES = ["log_calibration_value"]
CATEGORICAL_FEATURES = ["cat_a", "cat_b", "cat_c"]
IN_FEATURES = len(NUMERIC_FEATURES) + len(CATEGORICAL_FEATURES)  # == len(feature_dict)
OUTPUT_UNITS = 3

_LANES = 128      # vreg lane width
_SUBLANES = 8     # vreg sublane count (32-bit)


def _make_linear_kernel(n_feat: int, n_out: int):
    """Per output j: sum_f w[f,j] * x_f + b[j], fully on the VPU (no MXU)."""

    def kernel(*refs):
        x_refs = refs[:n_feat]            # each VMEM [block_rows, 128] stream dtype
        w_ref = refs[n_feat]              # SMEM  [n_feat, n_out] f32
        b_ref = refs[n_feat + 1]          # SMEM  [n_out] f32
        o_ref = refs[n_feat + 2]          # VMEM  [n_out, block_rows, 128] f32

        # Load each lane-dense batch tile once; upcast (free vs. HBM time, and
        # required on v5e where the VPU has no bf16 ALUs).
        xs = [r[...].astype(jnp.float32) for r in x_refs]
        for j in range(n_out):            # static unroll: n_out == 3
            acc = w_ref[0, j] * xs[0]
            for f in range(1, n_feat):    # static unroll: n_feat == 4
                acc = acc + w_ref[f, j] * xs[f]
            o_ref[j, :, :] = acc + b_ref[j]

    return kernel


def linear_model_forward(inputs, weight, bias, *, block_rows=2048,
                         stream_dtype=None, lane_dense_output=False):
    """Forward pass of LinearModel.

    inputs: dict of [batch, 1] (or [batch]) arrays for NUMERIC/CATEGORICAL features.
    weight: [F, OUT] float32 (transposed nn.Linear weight); bias: [OUT] float32.
    stream_dtype: dtype used to stream the features through HBM (default f32;
        jnp.bfloat16 halves input traffic, f32 accumulation is kept in-kernel).
    lane_dense_output: if True, return the lane-dense [OUT, batch] slab with NO
        extra transpose pass (preferred for perf-sensitive consumers). If False,
        return [batch, OUT] matching nn.Linear — this costs one extra HBM pass
        over the output (non-lane-dense destination, minor dim = OUT).
    """
    feats = [inputs[NUMERIC_FEATURES[0]]] + [inputs[k] for k in CATEGORICAL_FEATURES]
    feats = [jnp.asarray(f).reshape(-1) for f in feats]            # [B] each (free reshape)
    n_feat = len(feats)

    weight = jnp.asarray(weight, jnp.float32)
    bias = jnp.asarray(bias, jnp.float32)
    n_out = int(bias.shape[0])
    if weight.shape != (n_feat, n_out):
        raise ValueError(
            f"weight must have shape ({n_feat}, {n_out}) = [F, OUT] "
            f"(transposed nn.Linear weight); got {weight.shape}")

    B = int(feats[0].shape[0])
    for f in feats:
        if f.shape != (B,):
            raise ValueError("all feature columns must have the same batch size")

    stream_dtype = jnp.float32 if stream_dtype is None else jnp.dtype(stream_dtype)
    # Layout sublane multiple: 8 for 4-byte streams, 16 for 2-byte (bf16) streams.
    packing = max(1, 4 // jnp.dtype(stream_dtype).itemsize)
    sub = _SUBLANES * packing
    feats = [f.astype(stream_dtype) for f in feats]

    # Batch -> (rows, 128) lane-dense view. Pad only to a whole layout tile
    # (multiple of `sub` rows), i.e. < sub*128 wasted elements — NOT to a
    # multiple of block_rows (the grid handles a partial last block).
    rows = pl.cdiv(B, _LANES)
    rows_padded = pl.cdiv(rows, sub) * sub
    b_pad = rows_padded * _LANES
    if b_pad != B:
        feats = [jnp.pad(f, (0, b_pad - B)) for f in feats]        # tail-pad with zeros
    feats = [f.reshape(rows_padded, _LANES) for f in feats]        # free reshape

    # block_rows: multiple of `sub`, <= rows_padded. When there are >= 2 tiles of
    # rows, cap at ~rows/2 so the grid has >= 2 steps (keeps both v7x TensorCores
    # busy under dimension_semantics=("parallel",)).
    block_rows = max(sub, (int(block_rows) // sub) * sub)
    if rows_padded >= 2 * sub:
        half = pl.cdiv(pl.cdiv(rows_padded, 2), sub) * sub
        block_rows = min(block_rows, half)
    else:
        block_rows = rows_padded
    grid = (pl.cdiv(rows_padded, block_rows),)   # last block may overhang; Pallas masks it

    in_specs = (
        [pl.BlockSpec((block_rows, _LANES), lambda i: (i, 0)) for _ in range(n_feat)]
        + [
            pl.BlockSpec(memory_space=pltpu.MemorySpace.SMEM),   # weight scalars
            pl.BlockSpec(memory_space=pltpu.MemorySpace.SMEM),   # bias scalars
        ]
    )
    out_spec = pl.BlockSpec((n_out, block_rows, _LANES), lambda i: (0, i, 0))

    out_slab = pl.pallas_call(
        _make_linear_kernel(n_feat, n_out),
        out_shape=jax.ShapeDtypeStruct((n_out, rows_padded, _LANES), jnp.float32),
        grid=grid,
        in_specs=in_specs,
        out_specs=out_spec,
        compiler_params=pltpu.CompilerParams(
            dimension_semantics=("parallel",),          # batch tiles independent
            vmem_limit_bytes=32 * 1024 * 1024,          # ~14 MiB footprint @2048; safe on v7x
        ),
    )(*feats, weight, bias)

    # Lane-dense result: [OUT, rows_padded, 128] -> [OUT, B] (reshape is free;
    # the :B slice is a no-op when the batch was already tile-aligned).
    out_lane_dense = out_slab.reshape(n_out, b_pad)
    if b_pad != B:
        out_lane_dense = out_lane_dense[:, :B]
    if lane_dense_output:
        return out_lane_dense

    # NOTE(perf): this transpose is a full extra HBM pass over the output and its
    # destination minor dim is OUT(=3) (non-lane-dense stores). Prefer
    # lane_dense_output=True when the consumer can take [OUT, B].
    return out_lane_dense.T


if __name__ == "__main__":
    key = jax.random.PRNGKey(0)
    k_feat, k_w, k_b = jax.random.split(key, 3)

    # batch=5000 -> rows=40, rows_padded=40, block_rows capped to 24 -> grid of 2
    # with a PARTIAL last block; also exercises the 128-tile tail padding path.
    batch = 5000

    all_names = NUMERIC_FEATURES + CATEGORICAL_FEATURES
    feat_keys = jax.random.split(k_feat, IN_FEATURES)
    inputs = {
        name: jax.random.normal(fk, (batch, 1), dtype=jnp.float32)
        for name, fk in zip(all_names, feat_keys)
    }

    # nn.Linear params: weight stored transposed as [F, OUT], bias [OUT].
    weight = jax.random.normal(k_w, (IN_FEATURES, OUTPUT_UNITS), dtype=jnp.float32) * 0.1
    bias = jax.random.normal(k_b, (OUTPUT_UNITS,), dtype=jnp.float32) * 0.1

    # Plain-JAX reference (concat + matmul + bias) = the PyTorch forward.
    final_input = jnp.concatenate(
        [inputs[NUMERIC_FEATURES[0]]] + [inputs[k] for k in CATEGORICAL_FEATURES], axis=1
    )
    ref = final_input @ weight + bias

    # 1) Default [B, OUT] semantics, partial-last-block grid.
    out = jax.block_until_ready(linear_model_forward(inputs, weight, bias))
    assert out.shape == (batch, OUTPUT_UNITS)
    assert jnp.allclose(out, ref, atol=1e-5, rtol=1e-5), "mismatch vs reference"

    # 2) Lane-dense output path (no transpose pass).
    out_ld = jax.block_until_ready(
        linear_model_forward(inputs, weight, bias, lane_dense_output=True))
    assert out_ld.shape == (OUTPUT_UNITS, batch)
    assert jnp.allclose(out_ld.T, ref, atol=1e-5, rtol=1e-5), "lane-dense mismatch"

    # 3) Tile-aligned batch (4096 -> rows=32, block_rows=16, grid=2, exact blocks).
    b2 = 4096
    inputs2 = {name: v[:b2] for name, v in inputs.items()}
    out2 = jax.block_until_ready(linear_model_forward(inputs2, weight, bias))
    assert out2.shape == (b2, OUTPUT_UNITS)
    assert jnp.allclose(out2, ref[:b2], atol=1e-5, rtol=1e-5), "aligned-batch mismatch"

    # 4) Small ragged batch (1000 -> rows_padded=8, single block).
    b3 = 1000
    inputs3 = {name: v[:b3] for name, v in inputs.items()}
    out3 = jax.block_until_ready(linear_model_forward(inputs3, weight, bias))
    assert out3.shape == (b3, OUTPUT_UNITS)
    assert jnp.allclose(out3, ref[:b3], atol=1e-5, rtol=1e-5), "ragged mismatch"

    # 5) bf16 feature streaming (f32 accumulation), looser tolerance.
    out_bf16 = jax.block_until_ready(
        linear_model_forward(inputs2, weight, bias, stream_dtype=jnp.bfloat16))
    assert out_bf16.shape == (b2, OUTPUT_UNITS)
    assert jnp.allclose(out_bf16, ref[:b2], atol=5e-2, rtol=5e-2), "bf16 mismatch"

    print("KERNEL_OK")
</pallas_src>

<mosaic_0001>
module attributes {stable_mosaic.version = 11 : i64} {
  func.func @kernel(%arg0: i32, %arg1: memref<24x128xf32, #tpu.memory_space<vmem>>, %arg2: memref<24x128xf32, #tpu.memory_space<vmem>>, %arg3: memref<24x128xf32, #tpu.memory_space<vmem>>, %arg4: memref<24x128xf32, #tpu.memory_space<vmem>>, %arg5: memref<4x3xf32, #tpu.memory_space<smem>>, %arg6: memref<3xf32, #tpu.memory_space<smem>>, %arg7: memref<3x24x128xf32, #tpu.memory_space<vmem>>) attributes {dimension_semantics = [#tpu.dimension_semantics<parallel>], iteration_bounds = array<i64: 2>, scalar_prefetch = 0 : i64, scratch_operands = 0 : i64, tpu.core_type = #tpu.core_type<tc>, window_params = [{transform_indices = @transform_0, window_bounds = array<i64: 24, 128>}, {transform_indices = @transform_1, window_bounds = array<i64: 24, 128>}, {transform_indices = @transform_2, window_bounds = array<i64: 24, 128>}, {transform_indices = @transform_3, window_bounds = array<i64: 24, 128>}, {transform_indices = @transform_4, window_bounds = array<i64: 4, 3>}, {transform_indices = @transform_5, window_bounds = array<i64: 3>}, {transform_indices = @transform_6, window_bounds = array<i64: 3, 24, 128>}]} {
    %c0 = arith.constant 0 : index
    %c0_0 = arith.constant 0 : index
    %0 = vector.load %arg1[%c0, %c0_0] : memref<24x128xf32, #tpu.memory_space<vmem>>, vector<24x128xf32>
    %c0_1 = arith.constant 0 : index
    %c0_2 = arith.constant 0 : index
    %1 = vector.load %arg2[%c0_1, %c0_2] : memref<24x128xf32, #tpu.memory_space<vmem>>, vector<24x128xf32>
    %c0_3 = arith.constant 0 : index
    %c0_4 = arith.constant 0 : index
    %2 = vector.load %arg3[%c0_3, %c0_4] : memref<24x128xf32, #tpu.memory_space<vmem>>, vector<24x128xf32>
    %c0_5 = arith.constant 0 : index
    %c0_6 = arith.constant 0 : index
    %3 = vector.load %arg4[%c0_5, %c0_6] : memref<24x128xf32, #tpu.memory_space<vmem>>, vector<24x128xf32>
    %c0_7 = arith.constant 0 : index
    %c0_8 = arith.constant 0 : index
    %4 = memref.load %arg5[%c0_7, %c0_8] : memref<4x3xf32, #tpu.memory_space<smem>>
    %5 = vector.broadcast %4 : f32 to vector<24x128xf32>
    %6 = arith.mulf %5, %0 : vector<24x128xf32>
    %c1 = arith.constant 1 : index
    %c0_9 = arith.constant 0 : index
    %7 = memref.load %arg5[%c1, %c0_9] : memref<4x3xf32, #tpu.memory_space<smem>>
    %8 = vector.broadcast %7 : f32 to vector<24x128xf32>
    %9 = arith.mulf %8, %1 : vector<24x128xf32>
    %10 = arith.addf %6, %9 : vector<24x128xf32>
    %c2 = arith.constant 2 : index
    %c0_10 = arith.constant 0 : index
    %11 = memref.load %arg5[%c2, %c0_10] : memref<4x3xf32, #tpu.memory_space<smem>>
    %12 = vector.broadcast %11 : f32 to vector<24x128xf32>
    %13 = arith.mulf %12, %2 : vector<24x128xf32>
    %14 = arith.addf %10, %13 : vector<24x128xf32>
    %c3 = arith.constant 3 : index
    %c0_11 = arith.constant 0 : index
    %15 = memref.load %arg5[%c3, %c0_11] : memref<4x3xf32, #tpu.memory_space<smem>>
    %16 = vector.broadcast %15 : f32 to vector<24x128xf32>
    %17 = arith.mulf %16, %3 : vector<24x128xf32>
    %18 = arith.addf %14, %17 : vector<24x128xf32>
    %c0_12 = arith.constant 0 : index
    %19 = memref.load %arg6[%c0_12] : memref<3xf32, #tpu.memory_space<smem>>
    %20 = vector.broadcast %19 : f32 to vector<24x128xf32>
    %21 = arith.addf %18, %20 : vector<24x128xf32>
    %c0_13 = arith.constant 0 : index
    %c0_14 = arith.constant 0 : index
    %c0_15 = arith.constant 0 : index
    %22 = vector.load %arg7[%c0_13, %c0_14, %c0_15] : memref<3x24x128xf32, #tpu.memory_space<vmem>>, vector<1x24x128xf32>
    %23 = vector.shape_cast %22 : vector<1x24x128xf32> to vector<24x128xf32>
    %24 = vector.shape_cast %21 : vector<24x128xf32> to vector<1x24x128xf32>
    tpu.vector_store %arg7[%c0_13, %c0_14, %c0_15], %24 {strides = array<i32>} : memref<3x24x128xf32, #tpu.memory_space<vmem>>, vector<1x24x128xf32>,
    %c0_16 = arith.constant 0 : index
    %c1_17 = arith.constant 1 : index
    %25 = memref.load %arg5[%c0_16, %c1_17] : memref<4x3xf32, #tpu.memory_space<smem>>
    %26 = vector.broadcast %25 : f32 to vector<24x128xf32>
    %27 = arith.mulf %26, %0 : vector<24x128xf32>
    %c1_18 = arith.constant 1 : index
    %c1_19 = arith.constant 1 : index
    %28 = memref.load %arg5[%c1_18, %c1_19] : memref<4x3xf32, #tpu.memory_space<smem>>
    %29 = vector.broadcast %28 : f32 to vector<24x128xf32>
    %30 = arith.mulf %29, %1 : vector<24x128xf32>
    %31 = arith.addf %27, %30 : vector<24x128xf32>
    %c2_20 = arith.constant 2 : index
    %c1_21 = arith.constant 1 : index
    %32 = memref.load %arg5[%c2_20, %c1_21] : memref<4x3xf32, #tpu.memory_space<smem>>
    %33 = vector.broadcast %32 : f32 to vector<24x128xf32>
    %34 = arith.mulf %33, %2 : vector<24x128xf32>
    %35 = arith.addf %31, %34 : vector<24x128xf32>
    %c3_22 = arith.constant 3 : index
    %c1_23 = arith.constant 1 : index
    %36 = memref.load %arg5[%c3_22, %c1_23] : memref<4x3xf32, #tpu.memory_space<smem>>
    %37 = vector.broadcast %36 : f32 to vector<24x128xf32>
    %38 = arith.mulf %37, %3 : vector<24x128xf32>
    %39 = arith.addf %35, %38 : vector<24x128xf32>
    %c1_24 = arith.constant 1 : index
    %40 = memref.load %arg6[%c1_24] : memref<3xf32, #tpu.memory_space<smem>>
    %41 = vector.broadcast %40 : f32 to vector<24x128xf32>
    %42 = arith.addf %39, %41 : vector<24x128xf32>
    %c1_25 = arith.constant 1 : index
    %c0_26 = arith.constant 0 : index
    %c0_27 = arith.constant 0 : index
    %43 = vector.load %arg7[%c1_25, %c0_26, %c0_27] : memref<3x24x128xf32, #tpu.memory_space<vmem>>, vector<1x24x128xf32>
    %44 = vector.shape_cast %43 : vector<1x24x128xf32> to vector<24x128xf32>
    %45 = vector.shape_cast %42 : vector<24x128xf32> to vector<1x24x128xf32>
    tpu.vector_store %arg7[%c1_25, %c0_26, %c0_27], %45 {strides = array<i32>} : memref<3x24x128xf32, #tpu.memory_space<vmem>>, vector<1x24x128xf32>,
    %c0_28 = arith.constant 0 : index
    %c2_29 = arith.constant 2 : index
    %46 = memref.load %arg5[%c0_28, %c2_29] : memref<4x3xf32, #tpu.memory_space<smem>>
    %47 = vector.broadcast %46 : f32 to vector<24x128xf32>
    %48 = arith.mulf %47, %0 : vector<24x128xf32>
    %c1_30 = arith.constant 1 : index
    %c2_31 = arith.constant 2 : index
    %49 = memref.load %arg5[%c1_30, %c2_31] : memref<4x3xf32, #tpu.memory_space<smem>>
    %50 = vector.broadcast %49 : f32 to vector<24x128xf32>
    %51 = arith.mulf %50, %1 : vector<24x128xf32>
    %52 = arith.addf %48, %51 : vector<24x128xf32>
    %c2_32 = arith.constant 2 : index
    %c2_33 = arith.constant 2 : index
    %53 = memref.load %arg5[%c2_32, %c2_33] : memref<4x3xf32, #tpu.memory_space<smem>>
    %54 = vector.broadcast %53 : f32 to vector<24x128xf32>
    %55 = arith.mulf %54, %2 : vector<24x128xf32>
    %56 = arith.addf %52, %55 : vector<24x128xf32>
    %c3_34 = arith.constant 3 : index
    %c2_35 = arith.constant 2 : index
    %57 = memref.load %arg5[%c3_34, %c2_35] : memref<4x3xf32, #tpu.memory_space<smem>>
    %58 = vector.broadcast %57 : f32 to vector<24x128xf32>
    %59 = arith.mulf %58, %3 : vector<24x128xf32>
    %60 = arith.addf %56, %59 : vector<24x128xf32>
    %c2_36 = arith.constant 2 : index
    %61 = memref.load %arg6[%c2_36] : memref<3xf32, #tpu.memory_space<smem>>
    %62 = vector.broadcast %61 : f32 to vector<24x128xf32>
    %63 = arith.addf %60, %62 : vector<24x128xf32>
    %c2_37 = arith.constant 2 : index
    %c0_38 = arith.constant 0 : index
    %c0_39 = arith.constant 0 : index
    %64 = vector.load %arg7[%c2_37, %c0_38, %c0_39] : memref<3x24x128xf32, #tpu.memory_space<vmem>>, vector<1x24x128xf32>
    %65 = vector.shape_cast %64 : vector<1x24x128xf32> to vector<24x128xf32>
    %66 = vector.shape_cast %63 : vector<24x128xf32> to vector<1x24x128xf32>
    tpu.vector_store %arg7[%c2_37, %c0_38, %c0_39], %66 {strides = array<i32>} : memref<3x24x128xf32, #tpu.memory_space<vmem>>, vector<1x24x128xf32>,
    return
  }
  func.func @transform_0(%arg0: i32) -> (i32, i32) {
    %c0_i32 = arith.constant 0 : i32
    %c0_i32_0 = arith.constant 0 : i32
    return %arg0, %c0_i32 : i32, i32
  }
  func.func @transform_1(%arg0: i32) -> (i32, i32) {
    %c0_i32 = arith.constant 0 : i32
    %c0_i32_0 = arith.constant 0 : i32
    return %arg0, %c0_i32 : i32, i32
  }
  func.func @transform_2(%arg0: i32) -> (i32, i32) {
    %c0_i32 = arith.constant 0 : i32
    %c0_i32_0 = arith.constant 0 : i32
    return %arg0, %c0_i32 : i32, i32
  }
  func.func @transform_3(%arg0: i32) -> (i32, i32) {
    %c0_i32 = arith.constant 0 : i32
    %c0_i32_0 = arith.constant 0 : i32
    return %arg0, %c0_i32 : i32, i32
  }
  func.func @transform_4(%arg0: i32) -> (i32, i32) {
    %c0_i32 = arith.constant 0 : i32
    %c0_i32_0 = arith.constant 0 : i32
    %c0_i32_1 = arith.constant 0 : i32
    return %c0_i32, %c0_i32_0 : i32, i32
  }
  func.func @transform_5(%arg0: i32) -> i32 {
    %c0_i32 = arith.constant 0 : i32
    %c0_i32_0 = arith.constant 0 : i32
    return %c0_i32 : i32
  }
  func.func @transform_6(%arg0: i32) -> (i32, i32, i32) {
    %c0_i32 = arith.constant 0 : i32
    %c0_i32_0 = arith.constant 0 : i32
    %c0_i32_1 = arith.constant 0 : i32
    return %c0_i32, %arg0, %c0_i32_0 : i32, i32, i32
  }
}

</mosaic_0001>

<bundles_post_ra>
// kernel: tpu_custom_call.1
= control target key start
LH: loop header
LB: loop body
LE: loop exit
PB: predicated region body
PF: predicated region fallthrough
CT: control target
= control target key end

     0   :  { %s1693_s0 = inlined_call_operand.hbm [shape: f32[40,128], index: 0, kind: input, shape index: {}]   ;;  %s1694_s1 = inlined_call_operand.hbm [shape: f32[40,128], index: 1, kind: input, shape index: {}]   ;;  %s1695_s2 = inlined_call_operand.hbm [shape: f32[40,128], index: 2, kind: input, shape index: {}]   ;;  %s1696_s3 = inlined_call_operand.hbm [shape: f32[40,128], index: 3, kind: input, shape index: {}]   ;;  %s1697_s4 = inlined_call_operand.hbm [shape: f32[4,3], index: 4, kind: input, shape index: {}]   ;;  %s1698_s5 = inlined_call_operand.vmem [shape: f32[3], index: 5, kind: input, shape index: {}]   ;;  %s1699_s6 = inlined_call_operand.hbm [shape: f32[3,40,128], index: 6, kind: output, shape index: {}]  }
   0x1   :  { %1704 = sst [smem:[#allocation25_spill]] %s1697_s4 }
   0x2   :  { %1705 = sst [smem:[#allocation26_spill]] %s1698_s5 }
   0x3   :  { %11 = vsyncpa [#allocation3], 0 }
   0x4   :  { %13 = vsyncpa [#allocation3 + $0x1], 0 }
   0x5   :  { %14 = vsyncpa [#allocation8], 0 }
   0x6   :  { %16 = vsyncpa [#allocation8 + $0x1], 0 }
   0x7   :  { %17 = vsyncpa [#allocation11], 0 }
   0x8   :  { %19 = vsyncpa [#allocation11 + $0x1], 0 }
   0x9   :  { %20 = vsyncpa [#allocation5], 0 }
   0xa   :  { %21 = vsyncpa [#allocation6], 0 }
   0xb   :  { %22 = vsyncpa [#allocation4], 0 }
   0xc   :  { %24 = vsyncpa [#allocation4 + $0x1], 0  ;;  %s1249_s21 = smov 0   ;;  %s1251_s22 = smov 0  }
   0xd   :  { %s1253_s23 = smov 0   ;;  %s1255_s24 = smov 0  }
   0xe LB: > { %s1270_s25 = sadd.s32 4294967295, %s1192_s24   ;;  %s810_s26 = sadd.s32 4294967294, %s1192_s24   ;;  %s1192_s24 = sphi %s1255_s24, %s1727_s24   ;;  %s1188_s23 = sphi %s1253_s23, %s1731_s23   ;;  %s1184_s22 = sphi %s1251_s22, %s1730_s22   ;;  %s1180_s21 = sphi %s1249_s21, %s1729_s21  }
   0xf   : > { %s1274_s27 = sadd.s32 1, %s1192_s24   ;;  %s37_s28 = sadd.s32 1, %s1188_s23 }
  0x10   : > { %1706 = sst [smem:[#allocation23_spill]] %s1274_s27  ;;  %s34_s29 = ssub.s32 %s1192_s24, %s1274_s27 }
  0x11   : > { %p44_p0 = scmp.ne.s32.totalorder %s1188_s23, %s1184_s22  ;;  %p35_p1 = scmp.eq.s32.totalorder %s34_s29, 0 }
  0x12   : > { %p45_p2 = scmp.eq.s32.totalorder %s1192_s24, 0  ;;  %p50_p3 = scmp.ne.s32.totalorder %s1184_s22, %s1180_s21 }
  0x13   : > { %p1703_p4 = scmp.eq.s32.totalorder %s1270_s25, 0  ;;  %p194_p7 = scmp.eq.s32.totalorder %s1270_s25, 1 }
  0x14   : > { %s1286_s30 = scalar_select %p35_p1, %s1188_s23, %s37_s28  }
  0x15   : > { %p1288_p5 = por %p45_p2, %p44_p0  ;;  %p1294_p6 = por %p1703_p4, %p50_p3 }
  0x16   : > { %1707 = sst [smem:[#allocation24_spill]] %s1286_s30  ;;  %p200_p8 = scmp.eq.s32.totalorder %s810_s26, 1 }
  0x17   : > { %p811_p9 = scmp.ge.s32.totalorder %s1192_s24, 1  ;;  %p207_p10 = scmp.lt.s32.totalorder %s1192_s24, 3 }
  0x18   : > { %p1301_p11 = por %p194_p7, %p44_p0  ;;  %p1305_p12 = por %p200_p8, %p50_p3 }
  0x19   : > { %p1309_p13 = pnand %p811_p9, %p207_p10  ;;  %s1713_s4 = sld [smem:[#allocation25_spill]] }
  0x1a   : > { %s1710_s9 = scalar_select %p1301_p11, 1, 0 }
  0x1b   : > { %s1711_s10 = scalar_select %p1305_p12, 1, 0 }
  0x1c   : > { %p888_p1 = pneg %p1309_p13  ;;  %s1714_s5 = sld [smem:[#allocation26_spill]] }
  0x1d   : > { %s1194_s18 = smov [#allocation12]   ;;  %s1195_s19 = smov [#allocation13]  }
  0x1e   : > { %p889_p0 = pnand %p888_p1, %p1703_p4  ;;  %p1702_p2 = scmp.ge.s32.totalorder %s1192_s24, 2 }
  0x1f   : > { %s219_s14 = sshll.u32 %s1713_s4, 4  ;;  %s220_s14 = int_to_ptr.hbm [resolvable:$true] %s219_s14 }
  0x20   : > { %891 = dma.hbm_to_smem (!%p889_p0), %s220_s14, 64, %s1194_s18, [#allocation5]  }
  0x21   : > { %236 = sbr.rel (%p1702_p2) target bundleno = 190 (0xbe), region = 24 }
  0x22   : > { %s229_s17 = sshll.u32 %s1714_s5, 4  ;;  %s230_s17 = int_to_ptr.vmem [resolvable:$true] %s229_s17 }
  0x23   : > { %894 = dma.vmem_to_smem (!%p889_p0), %s230_s17, 16, %s1195_s19, [#allocation6]  }
  0x26   : > { %239 = sbr.rel (!%p1288_p5) target bundleno = 76 (0x4c), region = 28  ;;  %s240_s20 = sand.u32 (%p1288_p5), 1, %s1188_s23  }
  0x27   : > { %s245_s26 = smul.u32 (%p1288_p5), 3, %s1192_s24  ;;  %s1333_s15 = scalar_lea.sflag (%p1288_p5), [#allocation3], %s240_s20 }
  0x28   : > { %s869_s28 = smul.u32 (%p1288_p5), 24, %s240_s20 }
  0x29   : > { %s246_s29 = ssub.s32 (%p1288_p5), 5, %s245_s26 }
  0x2a   : > { %p247_p3 = scmp.lt.s32.totalorder (%p1288_p5), %s246_s29, 3  ;;  %s244_s16 = scalar_lea.vmem (%p1288_p5), [#allocation2], %s869_s28 }
  0x2c   : > { %s1733_s29 = smov (!%p247_p3, %s246_s29), 3 }
  0x2d   : > { %s815_s12 = sshll.u32 %s1733_s29, 3 }
  0x2e   : > { %s250_s13 = ssub.s32 24, %s815_s12 }
  0x2f   : > { %s251_s14 = sshll.u32 %s250_s13, 4 }
  0x30   : > { %252 = vsyncadd %s1333_s15, %s251_s14  ;;  %p1336_p7 = scmp.ne.s32.totalorder %s815_s12, 0  ;;  %s864_s18 = smul.u32 24, %s1192_s24 }
  0x31   : > { %s1341_s19 = sshll.u32 %s244_s16, 4  ;;  %s819_s26 = sshll.u32 %s1733_s29, 7  ;;  %s260_s19 = int_to_ptr.vmem [resolvable:$true] %s1341_s19 }
  0x32   : > { %s255_s20 = scalar_lea.hbm %s1693_s0, %s864_s18  ;;  %s984_s12 = sshrl.u32 %s819_s26, 4 }
  0x33   : > { %s257_s28 = sshll.u32 %s255_s20, 4  ;;  %s993_s27 = scalar_lea.hbm %s1693_s0, 40  ;;  %s1348_s28 = int_to_ptr.hbm [resolvable:$true] %s257_s28 }
  0x34   : > { %s982_s14 = sshra.s32 %s1348_s28, 4  ;;  %s983_s14 = int_to_ptr.hbm [resolvable:$true] %s982_s14 }
  0x35   : > { %s989_s5 = scalar_lea.hbm %s983_s14, %s984_s12  ;;  %p994_p1 = scmp.lt.s32.totalorder %s983_s14, %s1693_s0 }
  0x36   : > { %p990_p8 = scmp.ne.s32.totalorder %s983_s14, %s989_s5  ;;  %p995_p0 = scmp.lt.s32.totalorder %s993_s27, %s989_s5 }
  0x38   : > { %p991_p9 = pnand %p990_p8, %p1336_p7  ;;  %p996_p3 = por %p995_p0, %p994_p1 }
  0x3a   : > { %p992_p10 = pneg %p991_p9 }
  0x3c   : > { %p997_p2 = pnand %p996_p3, %p992_p10 }
  0x3e   : > { %1000 = shalt.err (!%p997_p2)
}
  0x3f   : > { %s1001_s13 = sshra.s32 %s260_s19, 4  ;;  %s1196_s30 = smov [#allocation2]   ;;  %s1002_s13 = int_to_ptr.vmem [resolvable:$true] %s1001_s13 }
  0x40   : > { %s1008_s20 = scalar_lea.vmem %s1002_s13, %s984_s12  ;;  %s1012_s16 = scalar_lea.vmem %s1196_s30, 48 }
  0x41   : > { %p1009_p8 = scmp.ne.s32.totalorder %s1002_s13, %s1008_s20  ;;  %p1014_p12 = scmp.lt.s32.totalorder %s1012_s16, %s1008_s20 }
  0x43   : > { %p1010_p9 = pnand %p1009_p8, %p1336_p7 }
  0x45   : > { %p1011_p4 = pneg %p1010_p9 }
  0x47   : > { %p1016_p11 = pnand %p1014_p12, %p1011_p4 }
  0x49   : > { %1019 = shalt.err (!%p1016_p11)
}
  0x4a   : > { %s1197_s14 = smov 128   ;;  %s1198_s5 = smov 8  }
  0x4b   : > { %265 = dma.hbm_to_vmem [thread:$0]  (%p1336_p7), %s1348_s28, %s819_s26, %s260_s19, %s1333_s15, %s1197_s14, %s1197_s14, %s1198_s5  }
  0x4c PF: > { %268 = sbr.rel (!%p1288_p5) target bundleno = 114 (0x72), region = 32  ;;  %s269_s27 = sand.u32 (%p1288_p5), 1, %s1192_s24  }
  0x4d   : > { %s271_s12 = sand.u32 (%p1288_p5), 1, %s1188_s23   ;;  %s274_s18 = smul.u32 (%p1288_p5), 3, %s1192_s24 }
  0x4e   : > { %s870_s4 = smul.u32 (%p1288_p5), 24, %s271_s12  ;;  %s1381_s15 = scalar_lea.sflag (%p1288_p5), [#allocation8], %s269_s27 }
  0x4f   : > { %s275_s13 = ssub.s32 (%p1288_p5), 5, %s274_s18 }
  0x50   : > { %p276_p4 = scmp.lt.s32.totalorder (%p1288_p5), %s275_s13, 3  ;;  %s273_s19 = scalar_lea.vmem (%p1288_p5), [#allocation7], %s870_s4 }
  0x52   : > { %s1735_s13 = smov (!%p276_p4, %s275_s13), 3 }
  0x53   : > { %s820_s17 = sshll.u32 %s1735_s13, 3 }
  0x54   : > { %s279_s20 = ssub.s32 24, %s820_s17 }
  0x55   : > { %s280_s29 = sshll.u32 %s279_s20, 4 }
  0x56   : > { %281 = vsyncadd %s1381_s15, %s280_s29  ;;  %p1384_p11 = scmp.ne.s32.totalorder %s820_s17, 0  ;;  %s865_s28 = smul.u32 24, %s1192_s24 }
  0x57   : > { %s1389_s30 = sshll.u32 %s273_s19, 4  ;;  %s824_s16 = sshll.u32 %s1735_s13, 7  ;;  %s289_s30 = int_to_ptr.vmem [resolvable:$true] %s1389_s30 }
  0x58   : > { %s284_s27 = scalar_lea.hbm %s1694_s1, %s865_s28  ;;  %s1023_s18 = sshrl.u32 %s824_s16, 4 }
  0x59   : > { %s286_s12 = sshll.u32 %s284_s27, 4  ;;  %s1032_s19 = scalar_lea.hbm %s1694_s1, 40  ;;  %s1396_s12 = int_to_ptr.hbm [resolvable:$true] %s286_s12 }
  0x5a   : > { %s1021_s4 = sshra.s32 %s1396_s12, 4  ;;  %s1022_s4 = int_to_ptr.hbm [resolvable:$true] %s1021_s4 }
  0x5b   : > { %s1028_s17 = scalar_lea.hbm %s1022_s4, %s1023_s18  ;;  %p1033_p10 = scmp.lt.s32.totalorder %s1022_s4, %s1694_s1 }
  0x5c   : > { %p1029_p12 = scmp.ne.s32.totalorder %s1022_s4, %s1028_s17  ;;  %p1034_p1 = scmp.lt.s32.totalorder %s1032_s19, %s1028_s17 }
  0x5e   : > { %p1030_p2 = pnand %p1029_p12, %p1384_p11  ;;  %p1035_p0 = por %p1034_p1, %p1033_p10 }
  0x60   : > { %p1031_p7 = pneg %p1030_p2 }
  0x62   : > { %p1036_p3 = pnand %p1035_p0, %p1031_p7 }
  0x64   : > { %1039 = shalt.err (!%p1036_p3)
}
  0x65   : > { %s1040_s5 = sshra.s32 %s289_s30, 4  ;;  %s1199_s20 = smov [#allocation7]   ;;  %s1041_s5 = int_to_ptr.vmem [resolvable:$true] %s1040_s5 }
  0x66   : > { %s1047_s27 = scalar_lea.vmem %s1041_s5, %s1023_s18  ;;  %s1051_s29 = scalar_lea.vmem %s1199_s20, 48 }
  0x67   : > { %p1048_p8 = scmp.ne.s32.totalorder %s1041_s5, %s1047_s27  ;;  %p1053_p12 = scmp.lt.s32.totalorder %s1051_s29, %s1047_s27 }
  0x69   : > { %p1049_p9 = pnand %p1048_p8, %p1384_p11 }
  0x6b   : > { %p1050_p4 = pneg %p1049_p9 }
  0x6d   : > { %p1055_p2 = pnand %p1053_p12, %p1050_p4 }
  0x6f   : > { %1058 = shalt.err (!%p1055_p2)
}
  0x70   : > { %s1200_s4 = smov 128   ;;  %s1201_s17 = smov 8  }
  0x71   : > { %294 = dma.hbm_to_vmem [thread:$0]  (%p1384_p11), %s1396_s12, %s824_s16, %s289_s30, %s1381_s15, %s1200_s4, %s1200_s4, %s1201_s17  }
  0x72 PF: > { %297 = sbr.rel (!%p1288_p5) target bundleno = 152 (0x98), region = 36  ;;  %s298_s18 = sand.u32 (%p1288_p5), 1, %s1192_s24  }
  0x73   : > { %s300_s19 = sand.u32 (%p1288_p5), 1, %s1188_s23   ;;  %s303_s28 = smul.u32 (%p1288_p5), 3, %s1192_s24 }
  0x74   : > { %s871_s14 = smul.u32 (%p1288_p5), 24, %s300_s19  ;;  %s1429_s15 = scalar_lea.sflag (%p1288_p5), [#allocation8], %s298_s18 }
  0x75   : > { %s304_s5 = ssub.s32 (%p1288_p5), 5, %s303_s28 }
  0x76   : > { %p305_p7 = scmp.lt.s32.totalorder (%p1288_p5), %s304_s5, 3  ;;  %s302_s30 = scalar_lea.vmem (%p1288_p5), [#allocation9], %s871_s14 }
  0x78   : > { %s1737_s5 = smov (!%p305_p7, %s304_s5), 3 }
  0x79   : > { %s825_s26 = sshll.u32 %s1737_s5, 3 }
  0x7a   : > { %s308_s27 = ssub.s32 24, %s825_s26 }
  0x7b   : > { %s309_s13 = sshll.u32 %s308_s27, 4 }
  0x7c   : > { %310 = vsyncadd %s1429_s15, %s309_s13  ;;  %p1432_p11 = scmp.ne.s32.totalorder %s825_s26, 0  ;;  %s866_s12 = smul.u32 24, %s1192_s24 }
  0x7d   : > { %s1437_s20 = sshll.u32 %s302_s30, 4  ;;  %s829_s29 = sshll.u32 %s1737_s5, 7  ;;  %s318_s20 = int_to_ptr.vmem [resolvable:$true] %s1437_s20 }
  0x7e   : > { %s313_s18 = scalar_lea.hbm %s1695_s2, %s866_s12  ;;  %s1062_s28 = sshrl.u32 %s829_s29, 4 }
  0x7f   : > { %s315_s19 = sshll.u32 %s313_s18, 4  ;;  %s1071_s30 = scalar_lea.hbm %s1695_s2, 40  ;;  %s1444_s19 = int_to_ptr.hbm [resolvable:$true] %s315_s19 }
  0x80   : > { %s1060_s14 = sshra.s32 %s1444_s19, 4  ;;  %s1061_s14 = int_to_ptr.hbm [resolvable:$true] %s1060_s14 }
  0x81   : > { %s1067_s26 = scalar_lea.hbm %s1061_s14, %s1062_s28  ;;  %p1072_p3 = scmp.lt.s32.totalorder %s1061_s14, %s1695_s2 }
  0x82   : > { %p1068_p10 = scmp.ne.s32.totalorder %s1061_s14, %s1067_s26  ;;  %p1073_p8 = scmp.lt.s32.totalorder %s1071_s30, %s1067_s26 }
  0x84   : > { %p1069_p1 = pnand %p1068_p10, %p1432_p11  ;;  %p1074_p9 = por %p1073_p8, %p1072_p3 }
  0x86   : > { %p1070_p0 = pneg %p1069_p1 }
  0x88   : > { %p1075_p4 = pnand %p1074_p9, %p1070_p0 }
  0x8a   : > { %1078 = shalt.err (!%p1075_p4)
}
  0x8b   : > { %s1079_s17 = sshra.s32 %s318_s20, 4  ;;  %s1202_s27 = smov [#allocation9]   ;;  %s1080_s17 = int_to_ptr.vmem [resolvable:$true] %s1079_s17 }
  0x8c   : > { %s1086_s18 = scalar_lea.vmem %s1080_s17, %s1062_s28  ;;  %s1090_s13 = scalar_lea.vmem %s1202_s27, 48 }
  0x8d   : > { %p1087_p12 = scmp.ne.s32.totalorder %s1080_s17, %s1086_s18  ;;  %p1092_p10 = scmp.lt.s32.totalorder %s1090_s13, %s1086_s18 }
  0x8f   : > { %p1088_p2 = pnand %p1087_p12, %p1432_p11 }
  0x91   : > { %p1089_p7 = pneg %p1088_p2 }
  0x93   : > { %p1094_p1 = pnand %p1092_p10, %p1089_p7 }
  0x95   : > { %1097 = shalt.err (!%p1094_p1)
}
  0x96   : > { %s1203_s14 = smov 128   ;;  %s1204_s26 = smov 8  }
  0x97   : > { %323 = dma.hbm_to_vmem [thread:$0]  (%p1432_p11), %s1444_s19, %s829_s29, %s318_s20, %s1429_s15, %s1203_s14, %s1203_s14, %s1204_s26  }
  0x98 PF: > { %326 = sbr.rel (!%p1288_p5) target bundleno = 190 (0xbe), region = 40  ;;  %s327_s28 = sand.u32 (%p1288_p5), 1, %s1188_s23  }
  0x99   : > { %s332_s30 = smul.u32 (%p1288_p5), 3, %s1192_s24  ;;  %s1476_s27 = scalar_lea.sflag (%p1288_p5), [#allocation11], %s327_s28 }
  0x9a   : > { %s872_s4 = smul.u32 (%p1288_p5), 24, %s327_s28 }
  0x9b   : > { %s333_s12 = ssub.s32 (%p1288_p5), 5, %s332_s30 }
  0x9c   : > { %p334_p0 = scmp.lt.s32.totalorder (%p1288_p5), %s333_s12, 3  ;;  %s331_s5 = scalar_lea.vmem (%p1288_p5), [#allocation10], %s872_s4 }
  0x9e   : > { %s1739_s12 = smov (!%p334_p0, %s333_s12), 3 }
  0x9f   : > { %s830_s17 = sshll.u32 %s1739_s12, 3 }
  0xa0   : > { %s337_s18 = ssub.s32 24, %s830_s17 }
  0xa1   : > { %s338_s16 = sshll.u32 %s337_s18, 4 }
  0xa2   : > { %339 = vsyncadd %s1476_s27, %s338_s16  ;;  %p1479_p5 = scmp.ne.s32.totalorder %s830_s17, 0  ;;  %s867_s15 = smul.u32 24, %s1192_s24 }
  0xa3   : > { %s1484_s20 = sshll.u32 %s331_s5, 4  ;;  %s834_s29 = sshll.u32 %s1739_s12, 7  ;;  %s347_s20 = int_to_ptr.vmem [resolvable:$true] %s1484_s20 }
  0xa4   : > { %s342_s14 = scalar_lea.hbm %s1696_s3, %s867_s15  ;;  %s1101_s30 = sshrl.u32 %s834_s29, 4 }
  0xa5   : > { %s344_s26 = sshll.u32 %s342_s14, 4  ;;  %s1110_s16 = scalar_lea.hbm %s1696_s3, 40  ;;  %s1491_s26 = int_to_ptr.hbm [resolvable:$true] %s344_s26 }
  0xa6   : > { %s1099_s28 = sshra.s32 %s1491_s26, 4  ;;  %s1100_s28 = int_to_ptr.hbm [resolvable:$true] %s1099_s28 }
  0xa7   : > { %s1106_s4 = scalar_lea.hbm %s1100_s28, %s1101_s30  ;;  %p1111_p9 = scmp.lt.s32.totalorder %s1100_s28, %s1696_s3 }
  0xa8   : > { %p1107_p11 = scmp.ne.s32.totalorder %s1100_s28, %s1106_s4  ;;  %p1112_p4 = scmp.lt.s32.totalorder %s1110_s16, %s1106_s4 }
  0xaa   : > { %p1108_p3 = pnand %p1107_p11, %p1479_p5  ;;  %p1113_p12 = por %p1112_p4, %p1111_p9 }
  0xac   : > { %p1109_p8 = pneg %p1108_p3 }
  0xae   : > { %p1114_p2 = pnand %p1113_p12, %p1109_p8 }
  0xb0   : > { %1117 = shalt.err (!%p1114_p2)
}
  0xb1   : > { %s1118_s19 = sshra.s32 %s347_s20, 4  ;;  %s1205_s14 = smov [#allocation10]   ;;  %s1119_s19 = int_to_ptr.vmem [resolvable:$true] %s1118_s19 }
  0xb2   : > { %s1125_s13 = scalar_lea.vmem %s1119_s19, %s1101_s30  ;;  %s1129_s17 = scalar_lea.vmem %s1205_s14, 48 }
  0xb3   : > { %p1126_p7 = scmp.ne.s32.totalorder %s1119_s19, %s1125_s13  ;;  %p1131_p0 = scmp.lt.s32.totalorder %s1129_s17, %s1125_s13 }
  0xb5   : > { %p1127_p10 = pnand %p1126_p7, %p1479_p5 }
  0xb7   : > { %p1128_p1 = pneg %p1127_p10 }
  0xb9   : > { %p1133_p11 = pnand %p1131_p0, %p1128_p1 }
  0xbb   : > { %1136 = shalt.err (!%p1133_p11)
}
  0xbc   : > { %s1206_s28 = smov 128   ;;  %s1207_s4 = smov 8  }
  0xbd   : > { %352 = dma.hbm_to_vmem [thread:$0]  (%p1479_p5), %s1491_s26, %s834_s29, %s347_s20, %s1476_s27, %s1206_s28, %s1206_s28, %s1207_s4  }
  0xbe PF: > { %358 = sbr.rel (%p1309_p13) target bundleno = 268 (0x10c), region = 44  ;;  %s1519_s30 = sand.u32 (!%p1309_p13), 1, %s1184_s22  }
  0xbf   : > { %s873_s18 = smul.u32 (!%p1309_p13), 24, %s1519_s30  ;;  %s361_s16 = scalar_lea.sflag (!%p1309_p13), [#allocation3], %s1519_s30 }
  0xc1   : > { %s364_s5 = scalar_lea.vmem (!%p1309_p13), [#allocation2], %s873_s18 }
  0xc3   : > { %1155 = dma.done.wait (%p1294_p6), %s361_s16, 384  }
  0xc4   : > { %1157 = vsyncadd (%p1294_p6), %s361_s16, 4294966912  ;;  %s370_s12 = sand.u32 1, %s1270_s25   ;;  %s374_s11 = scalar_lea.vmem [#allocation7], %s873_s18 }
  0xc5   : > { %s371_s27 = scalar_lea.sflag [#allocation8], %s370_s12 }
  0xc6   : > { %1159 = dma.done.wait (%p1294_p6), %s371_s27, 768  }
  0xc7   : > { %1161 = vsyncadd (%p1294_p6), %s371_s27, 4294966528  ;;  %s384_s7 = scalar_lea.vmem [#allocation9], %s873_s18  ;;  %s391_s20 = scalar_lea.sflag [#allocation11], %s1519_s30 }
  0xc8   : > { %s1533_s29 = scalar_lea.vmem [#allocation10], %s873_s18 }
  0xc9   : > { %1163 = dma.done.wait (%p1294_p6), %s391_s20, 384  }
  0xca   : > { %1165 = vsyncadd (%p1294_p6), %s391_s20, 4294966912  ;;  %p1719_p13 = scmp.eq.s32.totalorder %s1270_s25, 0 }
  0xcc   : > { %1167 = dma.done.wait (%p1719_p13), [#allocation5], 64   ;;  %p1720_p5 = pmov %p1719_p13 }
  0xce   : > { %1169 = vsyncadd (%p1720_p5), [#allocation5], 4294967232  ;;  %p1721_p3 = pmov %p1720_p5 }
  0xd0   : > { %1171 = dma.done.wait (%p1721_p3), [#allocation6], 16   ;;  %p1722_p8 = pmov %p1721_p3 }
  0xd2   : > { %1173 = vsyncadd (%p1722_p8), [#allocation6], 4294967280 }
  0xd3   : > { %410 = sfence }
  0xd4   : > { %s487_s26 = sld [smem:[#allocation12]]  ;;  %v1547_v0 = vld [vmem:[%s364_s5] sm:$0xff]  ;;  %v1551_v1 = vld [vmem:[%s364_s5 + $0x8] sm:$0xff]  ;;  %v1553_v2 = vld [vmem:[%s364_s5 + $0x10] sm:$0xff]  ;;  %s874_s5 = smul.u32 72, %s1519_s30 }
  0xd5   : > { %s838_s15 = sld [smem:[#allocation12 + $0x80]]  ;;  %v1555_v3 = vld [vmem:[%s374_s11] sm:$0xff]  ;;  %v1557_v4 = vld [vmem:[%s374_s11 + $0x8] sm:$0xff]  ;;  %v1559_v5 = vld [vmem:[%s374_s11 + $0x10] sm:$0xff]  ;;  %p1723_p6 = scmp.ne.s32.totalorder %s1710_s9, 0 }
  0xd6   : > { %s839_s19 = sld [smem:[#allocation12 + $0x100]]  ;;  %v1563_v6 = vld [vmem:[%s384_s7] sm:$0xff]  ;;  %v1565_v8 = vld [vmem:[%s384_s7 + $0x8] sm:$0xff]  ;;  %v1567_v9 = vld [vmem:[%s384_s7 + $0x10] sm:$0xff]  ;;  %s1620_s20 = scalar_lea.vmem [#allocation14], %s874_s5 }
  0xd7   : > { %s840_s13 = sld [smem:[#allocation12 + $0x180]]  ;;  %v1572_v10 = vld [vmem:[%s1533_s29] sm:$0xff]  ;;  %v1581_v17 = vld [vmem:[%s1533_s29 + $0x8] sm:$0xff]  ;;  %v1585_v19 = vld [vmem:[%s1533_s29 + $0x10] sm:$0xff]  ;;  %s601_s29 = scalar_lea.sflag [#allocation4], %s1519_s30 }
  0xd8   : > { %s1549_s8 = sld [smem:[#allocation13]] }
  0xd9   : > { %s1561_s14 = sld [smem:[#allocation12 + $0x1]] }
  0xda   : > { %v488_v7 = vstv %s487_s26  ;;  %s1569_s17 = sld [smem:[#allocation12 + $0x81]] }
  0xdb   : > { %v489_v11 = vmul.f32 %v488_v7, %v1547_v0  ;;  %v493_v12 = vstv %s838_s15  ;;  %v490_v13 = vmul.f32 %v488_v7, %v1551_v1  ;;  %v491_v14 = vmul.f32 %v488_v7, %v1553_v2  ;;  %s1577_s28 = sld [smem:[#allocation12 + $0x101]] }
  0xdc   : > { %v494_v15 = vmul.f32 %v493_v12, %v1555_v3  ;;  %v501_v16 = vstv %s839_s19  ;;  %v495_v18 = vmul.f32 %v493_v12, %v1557_v4  ;;  %v496_v20 = vmul.f32 %v493_v12, %v1559_v5  ;;  %s844_s4 = sld [smem:[#allocation12 + $0x181]] }
  0xdd   : > { %v502_v21 = vmul.f32 %v501_v16, %v1563_v6  ;;  %v509_v22 = vstv %s840_s13  ;;  %v503_v23 = vmul.f32 %v501_v16, %v1565_v8  ;;  %v504_v24 = vmul.f32 %v501_v16, %v1567_v9  ;;  %s845_s18 = sld [smem:[#allocation13 + $0x1]] }
  0xde   : > { %v497_v25 = vadd.f32 %v494_v15, %v489_v11  ;;  %v510_v26 = vmul.f32 %v509_v22, %v1572_v10  ;;  %v517_v27 = vstv %s1549_s8  ;;  %v498_v28 = vadd.f32 %v495_v18, %v490_v13  ;;  %s1593_s16 = sld [smem:[#allocation12 + $0x2]] }
  0xdf   : > { %v511_v29 = vmul.f32 %v509_v22, %v1581_v17  ;;  %v499_v30 = vadd.f32 %v496_v20, %v491_v14  ;;  %v512_v31 = vmul.f32 %v509_v22, %v1585_v19  ;;  %v525_v32 = vstv %s1561_s14  ;;  %s1599_s12 = sld [smem:[#allocation12 + $0x82]] }
  0xe0   : > { %v505_v33 = vadd.f32 %v502_v21, %v497_v25  ;;  %v506_v34 = vadd.f32 %v503_v23, %v498_v28  ;;  %v526_v35 = vmul.f32 %v525_v32, %v1547_v0  ;;  %v530_v36 = vstv %s1569_s17  ;;  %s1603_s27 = sld [smem:[#allocation12 + $0x102]] }
  0xe1   : > { %v507_v37 = vadd.f32 %v504_v24, %v499_v30  ;;  %v531_v38 = vmul.f32 %v530_v36, %v1555_v3  ;;  %v538_v39 = vstv %s1577_s28  ;;  %v527_v40 = vmul.f32 %v525_v32, %v1551_v1  ;;  %s1608_s11 = sld [smem:[#allocation12 + $0x182]] }
  0xe2   : > { %v513_v41 = vadd.f32 %v510_v26, %v505_v33  ;;  %v514_v42 = vadd.f32 %v511_v29, %v506_v34  ;;  %v539_v43 = vmul.f32 %v538_v39, %v1563_v6  ;;  %v546_v44 = vstv %s844_s4  ;;  %s1612_s7 = sld [smem:[#allocation13 + $0x2]] }
  0xe3   : > { %v515_v45 = vadd.f32 %v512_v31, %v507_v37  ;;  %v534_v46 = vadd.f32 %v531_v38, %v526_v35  ;;  %v547_v47 = vmul.f32 %v546_v44, %v1572_v10  ;;  %v554_v48 = vstv %s845_s18 }
  0xe4   : > { %v518_v49 = vadd.f32 %v517_v27, %v513_v41  ;;  %v519_v50 = vadd.f32 %v517_v27, %v514_v42  ;;  %v532_v51 = vmul.f32 %v530_v36, %v1557_v4  ;;  %v540_v52 = vmul.f32 %v538_v39, %v1565_v8 }
  0xe5   : > { %v520_v53 = vadd.f32 %v517_v27, %v515_v45  ;;  %v542_v54 = vadd.f32 %v539_v43, %v534_v46  ;;  %v548_v55 = vmul.f32 %v546_v44, %v1581_v17  ;;  %v528_v56 = vmul.f32 %v525_v32, %v1553_v2 }
  0xe6   : > { %521 = vst [vmem:[%s1620_s20] sm:$0xff] %v518_v49  ;;  %v535_v57 = vadd.f32 %v532_v51, %v527_v40  ;;  %v533_v58 = vmul.f32 %v530_v36, %v1559_v5  ;;  %v541_v59 = vmul.f32 %v538_v39, %v1567_v9  ;;  %v549_v60 = vmul.f32 %v546_v44, %v1585_v19 }
  0xe7   : > { %522 = vst [vmem:[%s1620_s20 + $0x8] sm:$0xff] %v519_v50  ;;  %v550_v61 = vadd.f32 %v547_v47, %v542_v54  ;;  %v563_v62 = vstv %s1593_s16  ;;  %v568_v63 = vstv %s1599_s12  ;;  %v576_v7 = vstv %s1603_s27 }
  0xe8   : > { %523 = vst [vmem:[%s1620_s20 + $0x10] sm:$0xff] %v520_v53  ;;  %v543_v11 = vadd.f32 %v540_v52, %v535_v57  ;;  %v536_v12 = vadd.f32 %v533_v58, %v528_v56  ;;  %v564_v13 = vmul.f32 %v563_v62, %v1547_v0  ;;  %v569_v14 = vmul.f32 %v568_v63, %v1555_v3 }
  0xe9   : > { %v555_v15 = vadd.f32 %v554_v48, %v550_v61  ;;  %v577_v16 = vmul.f32 %v576_v7, %v1563_v6  ;;  %v584_v18 = vstv %s1608_s11  ;;  %v592_v24 = vstv %s1612_s7 }
  0xea   : > { %v551_v20 = vadd.f32 %v548_v55, %v543_v11  ;;  %v544_v21 = vadd.f32 %v541_v59, %v536_v12  ;;  %v572_v22 = vadd.f32 %v569_v14, %v564_v13  ;;  %v585_v23 = vmul.f32 %v584_v18, %v1572_v10 }
  0xeb   : > { %846 = vst [vmem:[%s1620_s20 + $0x18] sm:$0xff] %v555_v15  ;;  %v565_v25 = vmul.f32 %v563_v62, %v1551_v1  ;;  %v570_v26 = vmul.f32 %v568_v63, %v1557_v4  ;;  %v578_v0 = vmul.f32 %v576_v7, %v1565_v8  ;;  %v566_v6 = vmul.f32 %v563_v62, %v1553_v2 }
  0xec   : > { %v556_v3 = vadd.f32 %v554_v48, %v551_v20  ;;  %v552_v27 = vadd.f32 %v549_v60, %v544_v21  ;;  %v580_v28 = vadd.f32 %v577_v16, %v572_v22  ;;  %v586_v30 = vmul.f32 %v584_v18, %v1581_v17 }
  0xed   : > { %v573_v29 = vadd.f32 %v570_v26, %v565_v25  ;;  %v571_v10 = vmul.f32 %v568_v63, %v1559_v5  ;;  %v579_v31 = vmul.f32 %v576_v7, %v1567_v9  ;;  %v587_v33 = vmul.f32 %v584_v18, %v1585_v19 }
  0xee   : > { %847 = vst [vmem:[%s1620_s20 + $0x20] sm:$0xff] %v556_v3  ;;  %v557_v1 = vadd.f32 %v554_v48, %v552_v27  ;;  %v588_v4 = vadd.f32 %v585_v23, %v580_v28 }
  0xef   : > { %v581_v8 = vadd.f32 %v578_v0, %v573_v29  ;;  %v574_v32 = vadd.f32 %v571_v10, %v566_v6 }
  0xf0   : > { %848 = vst [vmem:[%s1620_s20 + $0x28] sm:$0xff] %v557_v1  ;;  %v593_v34 = vadd.f32 %v592_v24, %v588_v4 }
  0xf1   : > { %v589_v2 = vadd.f32 %v586_v30, %v581_v8  ;;  %v582_v35 = vadd.f32 %v579_v31, %v574_v32 }
  0xf2   : > { %854 = vst [vmem:[%s1620_s20 + $0x30] sm:$0xff] %v593_v34 }
  0xf3   : > { %v594_v17 = vadd.f32 %v592_v24, %v589_v2  ;;  %v590_v36 = vadd.f32 %v587_v33, %v582_v35  ;;  %607 = sbr.rel (!%p1723_p6) target bundleno = 268 (0x10c), region = 72 }
  0xf5   : > { %855 = vst [vmem:[%s1620_s20 + $0x38] sm:$0xff] %v594_v17  ;;  %v595_v5 = vadd.f32 %v592_v24, %v590_v36 }
  0xf7   : > { %856 = vst [vmem:[%s1620_s20 + $0x40] sm:$0xff] %v595_v5 }
  0xf8   : > { %s608_s26 = smul.u32 3, %s1270_s25 }
  0xfa   : > { %s609_s15 = ssub.s32 5, %s608_s26 }
  0xfb   : > { %p610_p9 = scmp.lt.s32.totalorder %s609_s15, 3 }
  0xfd   : > { %s1741_s15 = smov (!%p610_p9, %s609_s15), 3 }
  0xfe   : > { %s612_s19 = smul.u32 24, %s1741_s15 }
 0x100   : > { %s613_s13 = ssub.s32 72, %s612_s19 }
 0x101   : > { %s614_s8 = sshll.u32 %s613_s13, 4 }
 0x102   : > { %615 = vsyncadd %s601_s29, %s614_s8  ;;  %p1660_p4 = scmp.ne.s32.totalorder %s612_s19, 0  ;;  %s868_s14 = smul.u32 24, %s1270_s25 }
 0x103   : > { %s631_s17 = sshll.u32 %s1620_s20, 4  ;;  %s861_s28 = smul.u32 384, %s1741_s15  ;;  %s632_s17 = int_to_ptr.vmem [resolvable:$true] %s631_s17 }
 0x104   : > { %s618_s16 = scalar_lea.hbm %s1699_s6, %s868_s14  ;;  %s1208_s12 = smov 384  }
 0x105   : > { %s633_s5 = sshll.u32 %s618_s16, 4  ;;  %640 = sst [smem:[#allocation16]] %s1208_s12  ;;  %s634_s5 = int_to_ptr.hbm [resolvable:$true] %s633_s5 }
 0x106   : > { %644 = sst [smem:[#allocation16 + $0x2]] %s1741_s15  ;;  %s1209_s27 = smov 640  }
 0x107   : > { %642 = sst [smem:[#allocation16 + $0x1]] %s1209_s27  ;;  %s1210_s11 = smov 128  }
 0x108   : > { %646 = sst [smem:[#allocation16 + $0x3]] %s1210_s11  ;;  %s1211_s25 = smov 8  }
 0x109   : > { %648 = sst [smem:[#allocation16 + $0x4]] %s1210_s11  ;;  %s1212_s7 = smov [#allocation15]  }
 0x10a   : > { %650 = sst [smem:[#allocation16 + $0x5]] %s1211_s25  ;;  %s1213_s20 = smov 0  }
 0x10b   : > { %652 = dma.general (%p1660_p4), %s632_s17, %s861_s28, %s634_s5, %s601_s29, %s1212_s7, [#allocation16], %s1213_s20, 0  }
 0x10c PF: > { %s661_s26 = sand.u32 1, %s1180_s21   ;;  %p1725_p12 = scmp.ne.s32.totalorder %s1711_s10, 0 }
 0x10d   : > { %p1726_p2 = scmp.ge.s32.totalorder %s1192_s24, 2  ;;  %s662_s15 = scalar_lea.sflag [#allocation4], %s661_s26 }
 0x10f   : > { %p896_p7 = pnand %p1726_p2, %p1725_p12 }
 0x111   : > { %p897_p10 = pneg %p896_p7 }
 0x113   : > { %1175 = dma.done.wait (%p897_p10), %s662_s15, 1152  }
 0x114   : > { %1177 = vsyncadd (%p897_p10), %s662_s15, 4294966144  ;;  %s1727_s24 = sld [smem:[#allocation23_spill]]  ;;  %s1729_s21 = smov %s1184_s22 }
 0x115   : > { %s1728_s19 = sld [smem:[#allocation24_spill]]  ;;  %s1730_s22 = smov %s1188_s23 }
 0x11a   : > { %p27_p1 = scmp.ge.s32.totalorder %s1727_s24, 4  }
 0x11b   : > { %s1731_s23 = smov %s1728_s19 }
 0x11c   :  { %29 = sbr.rel (!%p27_p1) target bundleno = 14 (0xe), region = 143 }
 0x121   :  { %668 = vsyncpa [#allocation3], 1 }
 0x122   :  { %670 = vsyncpa [#allocation3 + $0x1], 1 }
 0x123   :  { %671 = vsyncpa [#allocation8], 1 }
 0x124   :  { %673 = vsyncpa [#allocation8 + $0x1], 1 }
 0x125   :  { %674 = vsyncpa [#allocation11], 1 }
 0x126   :  { %676 = vsyncpa [#allocation11 + $0x1], 1 }
 0x127   :  { %677 = vsyncpa [#allocation4], 1 }
 0x128   :  { %679 = vsyncpa [#allocation4 + $0x1], 1 }
 0x129   :  { %680 = vsyncpa [#allocation5], 1 }
 0x12a   :  { %682 = vsyncpa [#allocation5 + $0x1], 1 }
 0x12b   :  { %683 = vsyncpa [#allocation6], 1 }
 0x12c   :  { %685 = vsyncpa [#allocation6 + $0x1], 1 }

</bundles_post_ra>
